<compile_context>
chip_gen: v6e
topology: v6e:2x2x1
jax: 0.10.0
libtpu: 0.0.40
codegen_flags: <defaults>
</compile_context>

<pallas_src>
import jax
import jax.numpy as jnp
from jax.experimental import pallas as pl
from jax.experimental.pallas import tpu as pltpu


def _matscalar_kernel(s_ref, a_ref, o_ref):
    # s_ref: (1,) scalar in SMEM; a_ref / o_ref: (tm, tn) VMEM tiles.
    o_ref[...] = a_ref[...] * s_ref[0]


def _sublane_multiple(itemsize: int) -> int:
    # Sub-32-bit dtypes pack along sublanes: f32 -> 8, bf16 -> 16, int8/fp8 -> 32.
    return {4: 8, 2: 16, 1: 32}.get(itemsize, 8)


def _maybe_lane_dense_reshape(a):
    """Elementwise-safe reshape to a lane-dense (rows, L) slab when the last dim
    is not a multiple of 128.  Returns (array, reshaped_flag)."""
    M, N = a.shape
    if N % 128 == 0 and N >= 128:
        return a, False
    total = M * N
    for L in (8192, 4096, 2048, 1024, 512, 256, 128):
        if total % L == 0:
            return a.reshape(total // L, L), True
    # No clean factorization: keep the original shape.  Full-N blocks remain
    # legal (ragged lane tail is masked) -- correct, just slightly slower.
    return a, False


def _choose_tiles(M, N, itemsize, tile_budget):
    sublane = _sublane_multiple(itemsize)
    bytes_per_row = N * itemsize
    min_rows = sublane if M > sublane else M

    if min_rows * bytes_per_row <= tile_budget:
        # Full-N, lane-dense row slabs.
        tm = tile_budget // bytes_per_row
        if tm >= M:
            tm = M
        else:
            tm = max(sublane, (tm // sublane) * sublane)
        tn = N
    else:
        # Very wide rows: even a minimum-height full-N slab would exceed the
        # per-tile VMEM budget, so tile columns too (tn a multiple of 128).
        tm = min(M, sublane)
        tn = tile_budget // max(1, tm * itemsize)
        if tn >= N:
            tn = N
        else:
            tn = max(128, (tn // 128) * 128)
    return tm, tn


def matscalar(a: jax.Array, s, *,
              target_tile_bytes: int = 8 * 1024 * 1024,
              vmem_limit_bytes: int = 48 << 20,
              donate_input: bool = False) -> jax.Array:
    """C = A * s.  A: (M, N), s: python float / 0-d array."""
    assert a.ndim == 2, "matscalar expects a 2-D matrix"
    orig_shape = a.shape
    dtype = a.dtype
    itemsize = jnp.dtype(dtype).itemsize

    # Lane-dense layout plumbing (free for an elementwise op).
    a2, reshaped = _maybe_lane_dense_reshape(a)
    M, N = a2.shape

    # Leave headroom: 2 input + 2 output double buffers plus compiler slack.
    tile_budget = min(target_tile_bytes, max(vmem_limit_bytes // 5, 128 * 1024))
    tm, tn = _choose_tiles(M, N, itemsize, tile_budget)

    grid = (pl.cdiv(M, tm), pl.cdiv(N, tn))
    s_arr = jnp.asarray(s, dtype=dtype).reshape((1,))

    out = pl.pallas_call(
        _matscalar_kernel,
        out_shape=jax.ShapeDtypeStruct((M, N), dtype),
        grid_spec=pltpu.PrefetchScalarGridSpec(
            num_scalar_prefetch=0,
            grid=grid,
            in_specs=[
                # Scalar lives in SMEM; same (only) value for every grid step.
                pl.BlockSpec(memory_space=pltpu.SMEM),
                pl.BlockSpec((tm, tn), lambda i, j: (i, j)),
            ],
            out_specs=pl.BlockSpec((tm, tn), lambda i, j: (i, j)),
        ),
        compiler_params=pltpu.CompilerParams(
            dimension_semantics=("parallel", "parallel"),
            # Raise scoped VMEM above v5e's 16 MiB default while staying
            # comfortably inside v7x's 64 MiB physical VMEM per TensorCore.
            vmem_limit_bytes=vmem_limit_bytes,
        ),
        input_output_aliases=({1: 0} if donate_input else {}),
    )(s_arr, a2)

    if reshaped:
        out = out.reshape(orig_shape)
    return out


if __name__ == "__main__":
    key = jax.random.PRNGKey(0)
    s = 3.14159

    # Primary check: lane-dense f32 matrix.
    M, N = 256, 512
    A = jax.random.normal(key, (M, N), dtype=jnp.float32)
    C = jax.block_until_ready(matscalar(A, s))
    ref = A * jnp.asarray(s, A.dtype)
    assert C.shape == (M, N) and C.dtype == jnp.float32
    assert jnp.allclose(C, ref, rtol=1e-6, atol=1e-6), "f32 mismatch vs reference"

    # Small / misaligned N (exercises the lane-dense fallback & masked tail).
    k1, k2 = jax.random.split(key)
    A2 = jax.random.normal(k1, (37, 96), dtype=jnp.float32)
    C2 = jax.block_until_ready(matscalar(A2, s))
    assert jnp.allclose(C2, A2 * jnp.asarray(s, A2.dtype), rtol=1e-6, atol=1e-6), \
        "misaligned-N mismatch vs reference"

    # Sub-32-bit dtype (exercises dtype-aware sublane handling).
    A3 = jax.random.normal(k2, (64, 256), dtype=jnp.bfloat16)
    C3 = jax.block_until_ready(matscalar(A3, s))
    assert jnp.allclose(C3.astype(jnp.float32),
                        (A3 * jnp.asarray(s, A3.dtype)).astype(jnp.float32),
                        rtol=1e-2, atol=1e-2), "bf16 mismatch vs reference"

    print("KERNEL_OK")
</pallas_src>

<mosaic_0001>
module attributes {stable_mosaic.version = 11 : i64} {
  func.func @_matscalar_kernel(%arg0: i32, %arg1: i32, %arg2: memref<1xf32, #tpu.memory_space<smem>>, %arg3: memref<256x512xf32, #tpu.memory_space<vmem>>, %arg4: memref<256x512xf32, #tpu.memory_space<vmem>>) attributes {dimension_semantics = [#tpu.dimension_semantics<parallel>, #tpu.dimension_semantics<parallel>], iteration_bounds = array<i64: 1, 1>, scalar_prefetch = 0 : i64, scratch_operands = 0 : i64, tpu.core_type = #tpu.core_type<tc>, window_params = [{transform_indices = @transform_0, window_bounds = array<i64: 1>}, {transform_indices = @transform_1, window_bounds = array<i64: 256, 512>}, {transform_indices = @transform_2, window_bounds = array<i64: 256, 512>}]} {
    %c0 = arith.constant 0 : index
    %c0_0 = arith.constant 0 : index
    %0 = vector.load %arg3[%c0, %c0_0] : memref<256x512xf32, #tpu.memory_space<vmem>>, vector<256x512xf32>
    %c0_1 = arith.constant 0 : index
    %1 = memref.load %arg2[%c0_1] : memref<1xf32, #tpu.memory_space<smem>>
    %2 = vector.broadcast %1 : f32 to vector<256x512xf32>
    %3 = arith.mulf %0, %2 : vector<256x512xf32>
    %c0_2 = arith.constant 0 : index
    %c0_3 = arith.constant 0 : index
    %4 = vector.load %arg4[%c0_2, %c0_3] : memref<256x512xf32, #tpu.memory_space<vmem>>, vector<256x512xf32>
    tpu.vector_store %arg4[%c0_2, %c0_3], %3 {strides = array<i32>} : memref<256x512xf32, #tpu.memory_space<vmem>>, vector<256x512xf32>,
    return
  }
  func.func @transform_0(%arg0: i32, %arg1: i32) -> i32 {
    %c0_i32 = arith.constant 0 : i32
    %c0_i32_0 = arith.constant 0 : i32
    return %c0_i32 : i32
  }
  func.func @transform_1(%arg0: i32, %arg1: i32) -> (i32, i32) {
    %c0_i32 = arith.constant 0 : i32
    return %arg0, %arg1 : i32, i32
  }
  func.func @transform_2(%arg0: i32, %arg1: i32) -> (i32, i32) {
    %c0_i32 = arith.constant 0 : i32
    return %arg0, %arg1 : i32, i32
  }
}

</mosaic_0001>

<bundles_post_ra>
// kernel: tpu_custom_call.1
= control target key start
LH: loop header
LB: loop body
LE: loop exit
PB: predicated region body
PF: predicated region fallthrough
CT: control target
= control target key end

     0   :  { %8 = vsyncpa [#allocation4], 0  ;;  %s642_s0 = inlined_call_operand.<no memory space> [shape: f32[1], index: 0, kind: input, shape index: {}]   ;;  %s643_s1 = inlined_call_operand.hbm [shape: f32[256,512], index: 1, kind: input, shape index: {}]   ;;  %s644_s2 = inlined_call_operand.hbm [shape: f32[256,512], index: 2, kind: output, shape index: {}]  }
   0x1   :  { %9 = vsyncpa [#allocation5], 0  ;;  %s478_s9 = smov [#allocation3]  }
   0x2   :  { %s17_s10 = sshll.u32 %s478_s9, 4  ;;  %s18_s10 = int_to_ptr.vmem [resolvable:$true] %s17_s10 }
   0x3   :  { %s442_s11 = scalar_lea.vmem %s18_s10, 16384  ;;  %p447_p1 = scmp.lt.s32.totalorder %s18_s10, %s18_s10 }
   0x4   :  { %p443_p0 = scmp.ne.s32.totalorder %s18_s10, %s442_s11  ;;  %p448_p2 = scmp.lt.s32.totalorder %s442_s11, %s442_s11 }
   0x6   :  { %p449_p3 = por %p448_p2, %p447_p1 }
   0x8   :  { %p450_p4 = pnand %p449_p3, %p443_p0 }
   0xa   :  { %453 = shalt.err (!%p450_p4)
}
   0xb   :  { %s479_s12 = smov 512   ;;  %s480_s13 = smov 32  }
   0xc   :  { %23 = dma.hbm_to_vmem [thread:$0]  %s643_s1, 16384, %s18_s10, [#allocation4], %s479_s12, %s479_s12, %s480_s13  }
   0xd   :  { %474 = dma.done.wait [#allocation4], 16384  }
   0xe   :  { %475 = vsyncadd [#allocation4], 4294950912  ;;  %v506_v0 = vstv %s642_s0  ;;  %v27_v1 = vld [vmem:[#allocation3] sm:$0xff]  ;;  %v28_v2 = vld [vmem:[#allocation3 + $0x8] sm:$0xff]  ;;  %s481_s0 = smov [#allocation6]  }
   0xf   :  { %v29_v3 = vld [vmem:[#allocation3 + $0x10] sm:$0xff]  ;;  %v157_v4 = vmul.f32 %v506_v0, %v27_v1  ;;  %v158_v5 = vmul.f32 %v506_v0, %v28_v2  ;;  %v30_v7 = vld [vmem:[#allocation3 + $0x18] sm:$0xff]  ;;  %v31_v8 = vld [vmem:[#allocation3 + $0x20] sm:$0xff]  ;;  %s418_s1 = sshll.u32 %s481_s0, 4  ;;  %s419_s1 = int_to_ptr.vmem [resolvable:$true] %s418_s1 }
  0x10   :  { %v159_v6 = vmul.f32 %v506_v0, %v29_v3  ;;  %v32_v9 = vld [vmem:[#allocation3 + $0x28] sm:$0xff]  ;;  %v160_v10 = vmul.f32 %v506_v0, %v30_v7  ;;  %v161_v11 = vmul.f32 %v506_v0, %v31_v8  ;;  %v33_v13 = vld [vmem:[#allocation3 + $0x30] sm:$0xff]  ;;  %v34_v14 = vld [vmem:[#allocation3 + $0x38] sm:$0xff]  ;;  %s454_s18 = scalar_lea.vmem %s419_s1, 16384  ;;  %p459_p6 = scmp.lt.s32.totalorder %s419_s1, %s419_s1 }
  0x11   :  { %v162_v12 = vmul.f32 %v506_v0, %v32_v9  ;;  %v35_v15 = vld [vmem:[#allocation3 + $0x40] sm:$0xff]  ;;  %285 = vst [vmem:[#allocation6] sm:$0xff] %v157_v4  ;;  %286 = vst [vmem:[#allocation6 + $0x8] sm:$0xff] %v158_v5  ;;  %v163_v16 = vmul.f32 %v506_v0, %v33_v13  ;;  %v164_v17 = vmul.f32 %v506_v0, %v34_v14  ;;  %v36_v19 = vld [vmem:[#allocation3 + $0x48] sm:$0xff]  ;;  %p455_p5 = scmp.ne.s32.totalorder %s419_s1, %s454_s18  ;;  %p460_p7 = scmp.lt.s32.totalorder %s454_s18, %s454_s18 }
  0x12   :  { %287 = vst [vmem:[#allocation6 + $0x10] sm:$0xff] %v159_v6  ;;  %v165_v18 = vmul.f32 %v506_v0, %v35_v15  ;;  %v37_v20 = vld [vmem:[#allocation3 + $0x50] sm:$0xff]  ;;  %v38_v21 = vld [vmem:[#allocation3 + $0x58] sm:$0xff]  ;;  %288 = vst [vmem:[#allocation6 + $0x18] sm:$0xff] %v160_v10  ;;  %v166_v22 = vmul.f32 %v506_v0, %v36_v19 }
  0x13   :  { %289 = vst [vmem:[#allocation6 + $0x20] sm:$0xff] %v161_v11  ;;  %290 = vst [vmem:[#allocation6 + $0x28] sm:$0xff] %v162_v12  ;;  %v167_v23 = vmul.f32 %v506_v0, %v37_v20  ;;  %v168_v24 = vmul.f32 %v506_v0, %v38_v21  ;;  %v39_v25 = vld [vmem:[#allocation3 + $0x60] sm:$0xff]  ;;  %v40_v26 = vld [vmem:[#allocation3 + $0x68] sm:$0xff]  ;;  %p461_p8 = por %p460_p7, %p459_p6 }
  0x14   :  { %v41_v27 = vld [vmem:[#allocation3 + $0x70] sm:$0xff]  ;;  %291 = vst [vmem:[#allocation6 + $0x30] sm:$0xff] %v163_v16  ;;  %292 = vst [vmem:[#allocation6 + $0x38] sm:$0xff] %v164_v17  ;;  %v169_v28 = vmul.f32 %v506_v0, %v39_v25  ;;  %v170_v29 = vmul.f32 %v506_v0, %v40_v26  ;;  %v42_v31 = vld [vmem:[#allocation3 + $0x78] sm:$0xff] }
  0x15   :  { %293 = vst [vmem:[#allocation6 + $0x40] sm:$0xff] %v165_v18  ;;  %v171_v30 = vmul.f32 %v506_v0, %v41_v27  ;;  %v43_v32 = vld [vmem:[#allocation3 + $0x80] sm:$0xff]  ;;  %v44_v33 = vld [vmem:[#allocation3 + $0x88] sm:$0xff]  ;;  %294 = vst [vmem:[#allocation6 + $0x48] sm:$0xff] %v166_v22  ;;  %v172_v34 = vmul.f32 %v506_v0, %v42_v31  ;;  %p462_p9 = pnand %p461_p8, %p455_p5 }
  0x16   :  { %295 = vst [vmem:[#allocation6 + $0x50] sm:$0xff] %v167_v23  ;;  %296 = vst [vmem:[#allocation6 + $0x58] sm:$0xff] %v168_v24  ;;  %v173_v35 = vmul.f32 %v506_v0, %v43_v32  ;;  %v174_v36 = vmul.f32 %v506_v0, %v44_v33  ;;  %v45_v37 = vld [vmem:[#allocation3 + $0x90] sm:$0xff]  ;;  %v46_v38 = vld [vmem:[#allocation3 + $0x98] sm:$0xff] }
  0x17   :  { %v47_v39 = vld [vmem:[#allocation3 + $0xa0] sm:$0xff]  ;;  %297 = vst [vmem:[#allocation6 + $0x60] sm:$0xff] %v169_v28  ;;  %298 = vst [vmem:[#allocation6 + $0x68] sm:$0xff] %v170_v29  ;;  %v175_v40 = vmul.f32 %v506_v0, %v45_v37  ;;  %v176_v41 = vmul.f32 %v506_v0, %v46_v38  ;;  %v48_v43 = vld [vmem:[#allocation3 + $0xa8] sm:$0xff] }
  0x18   :  { %299 = vst [vmem:[#allocation6 + $0x70] sm:$0xff] %v171_v30  ;;  %v177_v42 = vmul.f32 %v506_v0, %v47_v39  ;;  %v49_v44 = vld [vmem:[#allocation3 + $0xb0] sm:$0xff]  ;;  %v50_v45 = vld [vmem:[#allocation3 + $0xb8] sm:$0xff]  ;;  %300 = vst [vmem:[#allocation6 + $0x78] sm:$0xff] %v172_v34  ;;  %v178_v46 = vmul.f32 %v506_v0, %v48_v43 }
  0x19   :  { %301 = vst [vmem:[#allocation6 + $0x80] sm:$0xff] %v173_v35  ;;  %302 = vst [vmem:[#allocation6 + $0x88] sm:$0xff] %v174_v36  ;;  %v179_v47 = vmul.f32 %v506_v0, %v49_v44  ;;  %v180_v48 = vmul.f32 %v506_v0, %v50_v45  ;;  %v51_v49 = vld [vmem:[#allocation3 + $0xc0] sm:$0xff]  ;;  %v52_v50 = vld [vmem:[#allocation3 + $0xc8] sm:$0xff] }
  0x1a   :  { %v53_v51 = vld [vmem:[#allocation3 + $0xd0] sm:$0xff]  ;;  %303 = vst [vmem:[#allocation6 + $0x90] sm:$0xff] %v175_v40  ;;  %304 = vst [vmem:[#allocation6 + $0x98] sm:$0xff] %v176_v41  ;;  %v181_v52 = vmul.f32 %v506_v0, %v51_v49  ;;  %v182_v53 = vmul.f32 %v506_v0, %v52_v50  ;;  %v54_v55 = vld [vmem:[#allocation3 + $0xd8] sm:$0xff] }
  0x1b   :  { %305 = vst [vmem:[#allocation6 + $0xa0] sm:$0xff] %v177_v42  ;;  %v183_v54 = vmul.f32 %v506_v0, %v53_v51  ;;  %v55_v56 = vld [vmem:[#allocation3 + $0xe0] sm:$0xff]  ;;  %v56_v57 = vld [vmem:[#allocation3 + $0xe8] sm:$0xff]  ;;  %306 = vst [vmem:[#allocation6 + $0xa8] sm:$0xff] %v178_v46  ;;  %v184_v58 = vmul.f32 %v506_v0, %v54_v55 }
  0x1c   :  { %307 = vst [vmem:[#allocation6 + $0xb0] sm:$0xff] %v179_v47  ;;  %308 = vst [vmem:[#allocation6 + $0xb8] sm:$0xff] %v180_v48  ;;  %v185_v59 = vmul.f32 %v506_v0, %v55_v56  ;;  %v186_v60 = vmul.f32 %v506_v0, %v56_v57  ;;  %v57_v61 = vld [vmem:[#allocation3 + $0xf0] sm:$0xff]  ;;  %v58_v62 = vld [vmem:[#allocation3 + $0xf8] sm:$0xff] }
  0x1d   :  { %v59_v63 = vld [vmem:[#allocation3 + $0x100] sm:$0xff]  ;;  %309 = vst [vmem:[#allocation6 + $0xc0] sm:$0xff] %v181_v52  ;;  %310 = vst [vmem:[#allocation6 + $0xc8] sm:$0xff] %v182_v53  ;;  %v187_v1 = vmul.f32 %v506_v0, %v57_v61  ;;  %v188_v2 = vmul.f32 %v506_v0, %v58_v62  ;;  %v60_v4 = vld [vmem:[#allocation3 + $0x108] sm:$0xff] }
  0x1e   :  { %311 = vst [vmem:[#allocation6 + $0xd0] sm:$0xff] %v183_v54  ;;  %v189_v3 = vmul.f32 %v506_v0, %v59_v63  ;;  %v61_v5 = vld [vmem:[#allocation3 + $0x110] sm:$0xff]  ;;  %v62_v6 = vld [vmem:[#allocation3 + $0x118] sm:$0xff]  ;;  %312 = vst [vmem:[#allocation6 + $0xd8] sm:$0xff] %v184_v58  ;;  %v190_v7 = vmul.f32 %v506_v0, %v60_v4 }
  0x1f   :  { %313 = vst [vmem:[#allocation6 + $0xe0] sm:$0xff] %v185_v59  ;;  %314 = vst [vmem:[#allocation6 + $0xe8] sm:$0xff] %v186_v60  ;;  %v191_v8 = vmul.f32 %v506_v0, %v61_v5  ;;  %v192_v9 = vmul.f32 %v506_v0, %v62_v6  ;;  %v63_v10 = vld [vmem:[#allocation3 + $0x120] sm:$0xff]  ;;  %v64_v11 = vld [vmem:[#allocation3 + $0x128] sm:$0xff] }
  0x20   :  { %v65_v12 = vld [vmem:[#allocation3 + $0x130] sm:$0xff]  ;;  %315 = vst [vmem:[#allocation6 + $0xf0] sm:$0xff] %v187_v1  ;;  %316 = vst [vmem:[#allocation6 + $0xf8] sm:$0xff] %v188_v2  ;;  %v193_v13 = vmul.f32 %v506_v0, %v63_v10  ;;  %v194_v14 = vmul.f32 %v506_v0, %v64_v11  ;;  %v66_v16 = vld [vmem:[#allocation3 + $0x138] sm:$0xff] }
  0x21   :  { %317 = vst [vmem:[#allocation6 + $0x100] sm:$0xff] %v189_v3  ;;  %v195_v15 = vmul.f32 %v506_v0, %v65_v12  ;;  %v67_v17 = vld [vmem:[#allocation3 + $0x140] sm:$0xff]  ;;  %v68_v18 = vld [vmem:[#allocation3 + $0x148] sm:$0xff]  ;;  %318 = vst [vmem:[#allocation6 + $0x108] sm:$0xff] %v190_v7  ;;  %v196_v19 = vmul.f32 %v506_v0, %v66_v16 }
  0x22   :  { %319 = vst [vmem:[#allocation6 + $0x110] sm:$0xff] %v191_v8  ;;  %320 = vst [vmem:[#allocation6 + $0x118] sm:$0xff] %v192_v9  ;;  %v197_v20 = vmul.f32 %v506_v0, %v67_v17  ;;  %v198_v21 = vmul.f32 %v506_v0, %v68_v18  ;;  %v69_v22 = vld [vmem:[#allocation3 + $0x150] sm:$0xff]  ;;  %v70_v23 = vld [vmem:[#allocation3 + $0x158] sm:$0xff] }
  0x23   :  { %v71_v24 = vld [vmem:[#allocation3 + $0x160] sm:$0xff]  ;;  %321 = vst [vmem:[#allocation6 + $0x120] sm:$0xff] %v193_v13  ;;  %322 = vst [vmem:[#allocation6 + $0x128] sm:$0xff] %v194_v14  ;;  %v199_v25 = vmul.f32 %v506_v0, %v69_v22  ;;  %v200_v26 = vmul.f32 %v506_v0, %v70_v23  ;;  %v72_v28 = vld [vmem:[#allocation3 + $0x168] sm:$0xff] }
  0x24   :  { %323 = vst [vmem:[#allocation6 + $0x130] sm:$0xff] %v195_v15  ;;  %v201_v27 = vmul.f32 %v506_v0, %v71_v24  ;;  %v73_v29 = vld [vmem:[#allocation3 + $0x170] sm:$0xff]  ;;  %v74_v30 = vld [vmem:[#allocation3 + $0x178] sm:$0xff]  ;;  %324 = vst [vmem:[#allocation6 + $0x138] sm:$0xff] %v196_v19  ;;  %v202_v31 = vmul.f32 %v506_v0, %v72_v28 }
  0x25   :  { %325 = vst [vmem:[#allocation6 + $0x140] sm:$0xff] %v197_v20  ;;  %326 = vst [vmem:[#allocation6 + $0x148] sm:$0xff] %v198_v21  ;;  %v203_v32 = vmul.f32 %v506_v0, %v73_v29  ;;  %v204_v33 = vmul.f32 %v506_v0, %v74_v30  ;;  %v75_v34 = vld [vmem:[#allocation3 + $0x180] sm:$0xff]  ;;  %v76_v35 = vld [vmem:[#allocation3 + $0x188] sm:$0xff] }
  0x26   :  { %v77_v36 = vld [vmem:[#allocation3 + $0x190] sm:$0xff]  ;;  %327 = vst [vmem:[#allocation6 + $0x150] sm:$0xff] %v199_v25  ;;  %328 = vst [vmem:[#allocation6 + $0x158] sm:$0xff] %v200_v26  ;;  %v205_v37 = vmul.f32 %v506_v0, %v75_v34  ;;  %v206_v38 = vmul.f32 %v506_v0, %v76_v35  ;;  %v78_v40 = vld [vmem:[#allocation3 + $0x198] sm:$0xff] }
  0x27   :  { %329 = vst [vmem:[#allocation6 + $0x160] sm:$0xff] %v201_v27  ;;  %v207_v39 = vmul.f32 %v506_v0, %v77_v36  ;;  %v79_v41 = vld [vmem:[#allocation3 + $0x1a0] sm:$0xff]  ;;  %v80_v42 = vld [vmem:[#allocation3 + $0x1a8] sm:$0xff]  ;;  %330 = vst [vmem:[#allocation6 + $0x168] sm:$0xff] %v202_v31  ;;  %v208_v43 = vmul.f32 %v506_v0, %v78_v40 }
  0x28   :  { %331 = vst [vmem:[#allocation6 + $0x170] sm:$0xff] %v203_v32  ;;  %332 = vst [vmem:[#allocation6 + $0x178] sm:$0xff] %v204_v33  ;;  %v209_v44 = vmul.f32 %v506_v0, %v79_v41  ;;  %v210_v45 = vmul.f32 %v506_v0, %v80_v42  ;;  %v81_v46 = vld [vmem:[#allocation3 + $0x1b0] sm:$0xff]  ;;  %v82_v47 = vld [vmem:[#allocation3 + $0x1b8] sm:$0xff] }
  0x29   :  { %v83_v48 = vld [vmem:[#allocation3 + $0x1c0] sm:$0xff]  ;;  %333 = vst [vmem:[#allocation6 + $0x180] sm:$0xff] %v205_v37  ;;  %334 = vst [vmem:[#allocation6 + $0x188] sm:$0xff] %v206_v38  ;;  %v211_v49 = vmul.f32 %v506_v0, %v81_v46  ;;  %v212_v50 = vmul.f32 %v506_v0, %v82_v47  ;;  %v84_v52 = vld [vmem:[#allocation3 + $0x1c8] sm:$0xff] }
  0x2a   :  { %335 = vst [vmem:[#allocation6 + $0x190] sm:$0xff] %v207_v39  ;;  %v213_v51 = vmul.f32 %v506_v0, %v83_v48  ;;  %v85_v53 = vld [vmem:[#allocation3 + $0x1d0] sm:$0xff]  ;;  %v86_v54 = vld [vmem:[#allocation3 + $0x1d8] sm:$0xff]  ;;  %336 = vst [vmem:[#allocation6 + $0x198] sm:$0xff] %v208_v43  ;;  %v214_v55 = vmul.f32 %v506_v0, %v84_v52 }
  0x2b   :  { %337 = vst [vmem:[#allocation6 + $0x1a0] sm:$0xff] %v209_v44  ;;  %338 = vst [vmem:[#allocation6 + $0x1a8] sm:$0xff] %v210_v45  ;;  %v215_v56 = vmul.f32 %v506_v0, %v85_v53  ;;  %v216_v57 = vmul.f32 %v506_v0, %v86_v54  ;;  %v87_v58 = vld [vmem:[#allocation3 + $0x1e0] sm:$0xff]  ;;  %v88_v59 = vld [vmem:[#allocation3 + $0x1e8] sm:$0xff] }
  0x2c   :  { %v89_v60 = vld [vmem:[#allocation3 + $0x1f0] sm:$0xff]  ;;  %339 = vst [vmem:[#allocation6 + $0x1b0] sm:$0xff] %v211_v49  ;;  %340 = vst [vmem:[#allocation6 + $0x1b8] sm:$0xff] %v212_v50  ;;  %v217_v61 = vmul.f32 %v506_v0, %v87_v58  ;;  %v218_v62 = vmul.f32 %v506_v0, %v88_v59  ;;  %v90_v1 = vld [vmem:[#allocation3 + $0x1f8] sm:$0xff] }
  0x2d   :  { %341 = vst [vmem:[#allocation6 + $0x1c0] sm:$0xff] %v213_v51  ;;  %v219_v63 = vmul.f32 %v506_v0, %v89_v60  ;;  %v91_v2 = vld [vmem:[#allocation3 + $0x200] sm:$0xff]  ;;  %v92_v3 = vld [vmem:[#allocation3 + $0x208] sm:$0xff]  ;;  %342 = vst [vmem:[#allocation6 + $0x1c8] sm:$0xff] %v214_v55  ;;  %v220_v4 = vmul.f32 %v506_v0, %v90_v1 }
  0x2e   :  { %343 = vst [vmem:[#allocation6 + $0x1d0] sm:$0xff] %v215_v56  ;;  %344 = vst [vmem:[#allocation6 + $0x1d8] sm:$0xff] %v216_v57  ;;  %v221_v5 = vmul.f32 %v506_v0, %v91_v2  ;;  %v222_v6 = vmul.f32 %v506_v0, %v92_v3  ;;  %v93_v7 = vld [vmem:[#allocation3 + $0x210] sm:$0xff]  ;;  %v94_v8 = vld [vmem:[#allocation3 + $0x218] sm:$0xff] }
  0x2f   :  { %v95_v9 = vld [vmem:[#allocation3 + $0x220] sm:$0xff]  ;;  %345 = vst [vmem:[#allocation6 + $0x1e0] sm:$0xff] %v217_v61  ;;  %346 = vst [vmem:[#allocation6 + $0x1e8] sm:$0xff] %v218_v62  ;;  %v223_v10 = vmul.f32 %v506_v0, %v93_v7  ;;  %v224_v11 = vmul.f32 %v506_v0, %v94_v8  ;;  %v96_v13 = vld [vmem:[#allocation3 + $0x228] sm:$0xff] }
  0x30   :  { %347 = vst [vmem:[#allocation6 + $0x1f0] sm:$0xff] %v219_v63  ;;  %v225_v12 = vmul.f32 %v506_v0, %v95_v9  ;;  %v97_v14 = vld [vmem:[#allocation3 + $0x230] sm:$0xff]  ;;  %v98_v15 = vld [vmem:[#allocation3 + $0x238] sm:$0xff]  ;;  %348 = vst [vmem:[#allocation6 + $0x1f8] sm:$0xff] %v220_v4  ;;  %v226_v16 = vmul.f32 %v506_v0, %v96_v13 }
  0x31   :  { %349 = vst [vmem:[#allocation6 + $0x200] sm:$0xff] %v221_v5  ;;  %350 = vst [vmem:[#allocation6 + $0x208] sm:$0xff] %v222_v6  ;;  %v227_v17 = vmul.f32 %v506_v0, %v97_v14  ;;  %v228_v18 = vmul.f32 %v506_v0, %v98_v15  ;;  %v99_v19 = vld [vmem:[#allocation3 + $0x240] sm:$0xff]  ;;  %v100_v20 = vld [vmem:[#allocation3 + $0x248] sm:$0xff] }
  0x32   :  { %v101_v21 = vld [vmem:[#allocation3 + $0x250] sm:$0xff]  ;;  %351 = vst [vmem:[#allocation6 + $0x210] sm:$0xff] %v223_v10  ;;  %352 = vst [vmem:[#allocation6 + $0x218] sm:$0xff] %v224_v11  ;;  %v229_v22 = vmul.f32 %v506_v0, %v99_v19  ;;  %v230_v23 = vmul.f32 %v506_v0, %v100_v20  ;;  %v102_v25 = vld [vmem:[#allocation3 + $0x258] sm:$0xff] }
  0x33   :  { %353 = vst [vmem:[#allocation6 + $0x220] sm:$0xff] %v225_v12  ;;  %v231_v24 = vmul.f32 %v506_v0, %v101_v21  ;;  %v103_v26 = vld [vmem:[#allocation3 + $0x260] sm:$0xff]  ;;  %v104_v27 = vld [vmem:[#allocation3 + $0x268] sm:$0xff]  ;;  %354 = vst [vmem:[#allocation6 + $0x228] sm:$0xff] %v226_v16  ;;  %v232_v28 = vmul.f32 %v506_v0, %v102_v25 }
  0x34   :  { %355 = vst [vmem:[#allocation6 + $0x230] sm:$0xff] %v227_v17  ;;  %356 = vst [vmem:[#allocation6 + $0x238] sm:$0xff] %v228_v18  ;;  %v233_v29 = vmul.f32 %v506_v0, %v103_v26  ;;  %v234_v30 = vmul.f32 %v506_v0, %v104_v27  ;;  %v105_v31 = vld [vmem:[#allocation3 + $0x270] sm:$0xff]  ;;  %v106_v32 = vld [vmem:[#allocation3 + $0x278] sm:$0xff] }
  0x35   :  { %v107_v33 = vld [vmem:[#allocation3 + $0x280] sm:$0xff]  ;;  %357 = vst [vmem:[#allocation6 + $0x240] sm:$0xff] %v229_v22  ;;  %358 = vst [vmem:[#allocation6 + $0x248] sm:$0xff] %v230_v23  ;;  %v235_v34 = vmul.f32 %v506_v0, %v105_v31  ;;  %v236_v35 = vmul.f32 %v506_v0, %v106_v32  ;;  %v108_v37 = vld [vmem:[#allocation3 + $0x288] sm:$0xff] }
  0x36   :  { %359 = vst [vmem:[#allocation6 + $0x250] sm:$0xff] %v231_v24  ;;  %v237_v36 = vmul.f32 %v506_v0, %v107_v33  ;;  %v109_v38 = vld [vmem:[#allocation3 + $0x290] sm:$0xff]  ;;  %v110_v39 = vld [vmem:[#allocation3 + $0x298] sm:$0xff]  ;;  %360 = vst [vmem:[#allocation6 + $0x258] sm:$0xff] %v232_v28  ;;  %v238_v40 = vmul.f32 %v506_v0, %v108_v37 }
  0x37   :  { %361 = vst [vmem:[#allocation6 + $0x260] sm:$0xff] %v233_v29  ;;  %362 = vst [vmem:[#allocation6 + $0x268] sm:$0xff] %v234_v30  ;;  %v239_v41 = vmul.f32 %v506_v0, %v109_v38  ;;  %v240_v42 = vmul.f32 %v506_v0, %v110_v39  ;;  %v111_v43 = vld [vmem:[#allocation3 + $0x2a0] sm:$0xff]  ;;  %v112_v44 = vld [vmem:[#allocation3 + $0x2a8] sm:$0xff] }
  0x38   :  { %v113_v45 = vld [vmem:[#allocation3 + $0x2b0] sm:$0xff]  ;;  %363 = vst [vmem:[#allocation6 + $0x270] sm:$0xff] %v235_v34  ;;  %364 = vst [vmem:[#allocation6 + $0x278] sm:$0xff] %v236_v35  ;;  %v241_v46 = vmul.f32 %v506_v0, %v111_v43  ;;  %v242_v47 = vmul.f32 %v506_v0, %v112_v44  ;;  %v114_v49 = vld [vmem:[#allocation3 + $0x2b8] sm:$0xff] }
  0x39   :  { %365 = vst [vmem:[#allocation6 + $0x280] sm:$0xff] %v237_v36  ;;  %v243_v48 = vmul.f32 %v506_v0, %v113_v45  ;;  %v115_v50 = vld [vmem:[#allocation3 + $0x2c0] sm:$0xff]  ;;  %v116_v51 = vld [vmem:[#allocation3 + $0x2c8] sm:$0xff]  ;;  %366 = vst [vmem:[#allocation6 + $0x288] sm:$0xff] %v238_v40  ;;  %v244_v52 = vmul.f32 %v506_v0, %v114_v49 }
  0x3a   :  { %367 = vst [vmem:[#allocation6 + $0x290] sm:$0xff] %v239_v41  ;;  %368 = vst [vmem:[#allocation6 + $0x298] sm:$0xff] %v240_v42  ;;  %v245_v53 = vmul.f32 %v506_v0, %v115_v50  ;;  %v246_v54 = vmul.f32 %v506_v0, %v116_v51  ;;  %v117_v55 = vld [vmem:[#allocation3 + $0x2d0] sm:$0xff]  ;;  %v118_v56 = vld [vmem:[#allocation3 + $0x2d8] sm:$0xff] }
  0x3b   :  { %v119_v57 = vld [vmem:[#allocation3 + $0x2e0] sm:$0xff]  ;;  %369 = vst [vmem:[#allocation6 + $0x2a0] sm:$0xff] %v241_v46  ;;  %370 = vst [vmem:[#allocation6 + $0x2a8] sm:$0xff] %v242_v47  ;;  %v247_v58 = vmul.f32 %v506_v0, %v117_v55  ;;  %v248_v59 = vmul.f32 %v506_v0, %v118_v56  ;;  %v120_v61 = vld [vmem:[#allocation3 + $0x2e8] sm:$0xff] }
  0x3c   :  { %371 = vst [vmem:[#allocation6 + $0x2b0] sm:$0xff] %v243_v48  ;;  %v249_v60 = vmul.f32 %v506_v0, %v119_v57  ;;  %v121_v62 = vld [vmem:[#allocation3 + $0x2f0] sm:$0xff]  ;;  %v122_v63 = vld [vmem:[#allocation3 + $0x2f8] sm:$0xff]  ;;  %372 = vst [vmem:[#allocation6 + $0x2b8] sm:$0xff] %v244_v52  ;;  %v250_v1 = vmul.f32 %v506_v0, %v120_v61 }
  0x3d   :  { %373 = vst [vmem:[#allocation6 + $0x2c0] sm:$0xff] %v245_v53  ;;  %374 = vst [vmem:[#allocation6 + $0x2c8] sm:$0xff] %v246_v54  ;;  %v251_v2 = vmul.f32 %v506_v0, %v121_v62  ;;  %v252_v3 = vmul.f32 %v506_v0, %v122_v63  ;;  %v123_v4 = vld [vmem:[#allocation3 + $0x300] sm:$0xff]  ;;  %v124_v5 = vld [vmem:[#allocation3 + $0x308] sm:$0xff] }
  0x3e   :  { %v125_v6 = vld [vmem:[#allocation3 + $0x310] sm:$0xff]  ;;  %375 = vst [vmem:[#allocation6 + $0x2d0] sm:$0xff] %v247_v58  ;;  %376 = vst [vmem:[#allocation6 + $0x2d8] sm:$0xff] %v248_v59  ;;  %v253_v7 = vmul.f32 %v506_v0, %v123_v4  ;;  %v254_v8 = vmul.f32 %v506_v0, %v124_v5  ;;  %v126_v10 = vld [vmem:[#allocation3 + $0x318] sm:$0xff] }
  0x3f   :  { %377 = vst [vmem:[#allocation6 + $0x2e0] sm:$0xff] %v249_v60  ;;  %v255_v9 = vmul.f32 %v506_v0, %v125_v6  ;;  %v127_v11 = vld [vmem:[#allocation3 + $0x320] sm:$0xff]  ;;  %v128_v12 = vld [vmem:[#allocation3 + $0x328] sm:$0xff]  ;;  %378 = vst [vmem:[#allocation6 + $0x2e8] sm:$0xff] %v250_v1  ;;  %v256_v13 = vmul.f32 %v506_v0, %v126_v10 }
  0x40   :  { %379 = vst [vmem:[#allocation6 + $0x2f0] sm:$0xff] %v251_v2  ;;  %380 = vst [vmem:[#allocation6 + $0x2f8] sm:$0xff] %v252_v3  ;;  %v257_v14 = vmul.f32 %v506_v0, %v127_v11  ;;  %v258_v15 = vmul.f32 %v506_v0, %v128_v12  ;;  %v129_v16 = vld [vmem:[#allocation3 + $0x330] sm:$0xff]  ;;  %v130_v17 = vld [vmem:[#allocation3 + $0x338] sm:$0xff] }
  0x41   :  { %v131_v18 = vld [vmem:[#allocation3 + $0x340] sm:$0xff]  ;;  %381 = vst [vmem:[#allocation6 + $0x300] sm:$0xff] %v253_v7  ;;  %382 = vst [vmem:[#allocation6 + $0x308] sm:$0xff] %v254_v8  ;;  %v259_v19 = vmul.f32 %v506_v0, %v129_v16  ;;  %v260_v20 = vmul.f32 %v506_v0, %v130_v17  ;;  %v132_v22 = vld [vmem:[#allocation3 + $0x348] sm:$0xff] }
  0x42   :  { %383 = vst [vmem:[#allocation6 + $0x310] sm:$0xff] %v255_v9  ;;  %v261_v21 = vmul.f32 %v506_v0, %v131_v18  ;;  %v133_v23 = vld [vmem:[#allocation3 + $0x350] sm:$0xff]  ;;  %v134_v24 = vld [vmem:[#allocation3 + $0x358] sm:$0xff]  ;;  %384 = vst [vmem:[#allocation6 + $0x318] sm:$0xff] %v256_v13  ;;  %v262_v25 = vmul.f32 %v506_v0, %v132_v22 }
  0x43   :  { %385 = vst [vmem:[#allocation6 + $0x320] sm:$0xff] %v257_v14  ;;  %386 = vst [vmem:[#allocation6 + $0x328] sm:$0xff] %v258_v15  ;;  %v263_v26 = vmul.f32 %v506_v0, %v133_v23  ;;  %v264_v27 = vmul.f32 %v506_v0, %v134_v24  ;;  %v135_v28 = vld [vmem:[#allocation3 + $0x360] sm:$0xff]  ;;  %v136_v29 = vld [vmem:[#allocation3 + $0x368] sm:$0xff] }
  0x44   :  { %v137_v30 = vld [vmem:[#allocation3 + $0x370] sm:$0xff]  ;;  %387 = vst [vmem:[#allocation6 + $0x330] sm:$0xff] %v259_v19  ;;  %388 = vst [vmem:[#allocation6 + $0x338] sm:$0xff] %v260_v20  ;;  %v265_v31 = vmul.f32 %v506_v0, %v135_v28  ;;  %v266_v32 = vmul.f32 %v506_v0, %v136_v29  ;;  %v138_v34 = vld [vmem:[#allocation3 + $0x378] sm:$0xff] }
  0x45   :  { %389 = vst [vmem:[#allocation6 + $0x340] sm:$0xff] %v261_v21  ;;  %v267_v33 = vmul.f32 %v506_v0, %v137_v30  ;;  %v139_v35 = vld [vmem:[#allocation3 + $0x380] sm:$0xff]  ;;  %v140_v36 = vld [vmem:[#allocation3 + $0x388] sm:$0xff]  ;;  %390 = vst [vmem:[#allocation6 + $0x348] sm:$0xff] %v262_v25  ;;  %v268_v37 = vmul.f32 %v506_v0, %v138_v34 }
  0x46   :  { %391 = vst [vmem:[#allocation6 + $0x350] sm:$0xff] %v263_v26  ;;  %392 = vst [vmem:[#allocation6 + $0x358] sm:$0xff] %v264_v27  ;;  %v269_v38 = vmul.f32 %v506_v0, %v139_v35  ;;  %v270_v39 = vmul.f32 %v506_v0, %v140_v36  ;;  %v141_v40 = vld [vmem:[#allocation3 + $0x390] sm:$0xff]  ;;  %v142_v41 = vld [vmem:[#allocation3 + $0x398] sm:$0xff] }
  0x47   :  { %v143_v42 = vld [vmem:[#allocation3 + $0x3a0] sm:$0xff]  ;;  %393 = vst [vmem:[#allocation6 + $0x360] sm:$0xff] %v265_v31  ;;  %394 = vst [vmem:[#allocation6 + $0x368] sm:$0xff] %v266_v32  ;;  %v271_v43 = vmul.f32 %v506_v0, %v141_v40  ;;  %v272_v44 = vmul.f32 %v506_v0, %v142_v41  ;;  %v144_v46 = vld [vmem:[#allocation3 + $0x3a8] sm:$0xff] }
  0x48   :  { %395 = vst [vmem:[#allocation6 + $0x370] sm:$0xff] %v267_v33  ;;  %v273_v45 = vmul.f32 %v506_v0, %v143_v42  ;;  %v145_v47 = vld [vmem:[#allocation3 + $0x3b0] sm:$0xff]  ;;  %v146_v48 = vld [vmem:[#allocation3 + $0x3b8] sm:$0xff]  ;;  %396 = vst [vmem:[#allocation6 + $0x378] sm:$0xff] %v268_v37  ;;  %v274_v49 = vmul.f32 %v506_v0, %v144_v46 }
  0x49   :  { %397 = vst [vmem:[#allocation6 + $0x380] sm:$0xff] %v269_v38  ;;  %398 = vst [vmem:[#allocation6 + $0x388] sm:$0xff] %v270_v39  ;;  %v275_v50 = vmul.f32 %v506_v0, %v145_v47  ;;  %v276_v51 = vmul.f32 %v506_v0, %v146_v48  ;;  %v147_v52 = vld [vmem:[#allocation3 + $0x3c0] sm:$0xff]  ;;  %v148_v53 = vld [vmem:[#allocation3 + $0x3c8] sm:$0xff] }
  0x4a   :  { %v149_v54 = vld [vmem:[#allocation3 + $0x3d0] sm:$0xff]  ;;  %399 = vst [vmem:[#allocation6 + $0x390] sm:$0xff] %v271_v43  ;;  %400 = vst [vmem:[#allocation6 + $0x398] sm:$0xff] %v272_v44  ;;  %v277_v55 = vmul.f32 %v506_v0, %v147_v52  ;;  %v278_v56 = vmul.f32 %v506_v0, %v148_v53  ;;  %v150_v58 = vld [vmem:[#allocation3 + $0x3d8] sm:$0xff] }
  0x4b   :  { %401 = vst [vmem:[#allocation6 + $0x3a0] sm:$0xff] %v273_v45  ;;  %v279_v57 = vmul.f32 %v506_v0, %v149_v54  ;;  %v151_v59 = vld [vmem:[#allocation3 + $0x3e0] sm:$0xff]  ;;  %v152_v60 = vld [vmem:[#allocation3 + $0x3e8] sm:$0xff]  ;;  %402 = vst [vmem:[#allocation6 + $0x3a8] sm:$0xff] %v274_v49  ;;  %v280_v61 = vmul.f32 %v506_v0, %v150_v58 }
  0x4c   :  { %403 = vst [vmem:[#allocation6 + $0x3b0] sm:$0xff] %v275_v50  ;;  %404 = vst [vmem:[#allocation6 + $0x3b8] sm:$0xff] %v276_v51  ;;  %v281_v62 = vmul.f32 %v506_v0, %v151_v59  ;;  %v282_v63 = vmul.f32 %v506_v0, %v152_v60  ;;  %v153_v1 = vld [vmem:[#allocation3 + $0x3f0] sm:$0xff]  ;;  %v154_v2 = vld [vmem:[#allocation3 + $0x3f8] sm:$0xff] }
  0x4d   :  { %405 = vst [vmem:[#allocation6 + $0x3c0] sm:$0xff] %v277_v55  ;;  %406 = vst [vmem:[#allocation6 + $0x3c8] sm:$0xff] %v278_v56  ;;  %v283_v3 = vmul.f32 %v506_v0, %v153_v1  ;;  %v284_v4 = vmul.f32 %v506_v0, %v154_v2 }
  0x4e   :  { %407 = vst [vmem:[#allocation6 + $0x3d0] sm:$0xff] %v279_v57  ;;  %408 = vst [vmem:[#allocation6 + $0x3d8] sm:$0xff] %v280_v61 }
  0x4f   :  { %409 = vst [vmem:[#allocation6 + $0x3e0] sm:$0xff] %v281_v62  ;;  %410 = vst [vmem:[#allocation6 + $0x3e8] sm:$0xff] %v282_v63 }
  0x50   :  { %411 = vst [vmem:[#allocation6 + $0x3f0] sm:$0xff] %v283_v3  ;;  %412 = vst [vmem:[#allocation6 + $0x3f8] sm:$0xff] %v284_v4 }
  0x51   :  { %465 = shalt.err (!%p462_p9)
}
  0x52   :  { %424 = dma.vmem_to_hbm [thread:$0]  %s419_s1, 16384, %s644_s2, [#allocation5], %s479_s12, %s479_s12, %s480_s13  }
  0x53   :  { %476 = dma.done.wait [#allocation5], 16384  }
  0x54   :  { %477 = vsyncadd [#allocation5], 4294950912 }
  0x55   :  { %428 = vsyncpa [#allocation4], 1 }
  0x56   :  { %429 = vsyncpa [#allocation5], 1 }

</bundles_post_ra>
